<compile_context>
chip_gen: v5e
topology: v5e:2x2
jax: 0.10.0
libtpu: 0.0.40
codegen_flags: <defaults>
</compile_context>

<pallas_src>
import jax
import jax.numpy as jnp
from jax.experimental import pallas as pl
from jax.experimental.pallas import tpu as pltpu
import numpy as np

# ----------------------------- model sizes ---------------------------------
VOCAB = 32
EMBED = 16
HIDDEN = 32
LAYERS = 2
LATENT = 8
BATCH = 4       # review note: B=8 would be "free" (fills the f32 sublane tile)
PADDING = 6

OUT_W = 128     # lane-dense token-output width; sliced to PADDING in wrapper


# --------------------------- small helpers ----------------------------------
def _argmax_last(x):
    # first-occurrence argmax over last axis (matches torch.argmax tie-break)
    idx = jax.lax.broadcasted_iota(jnp.int32, x.shape, x.ndim - 1)
    maxv = jnp.max(x, axis=-1, keepdims=True)
    cand = jnp.where(x == maxv, idx, jnp.int32(x.shape[-1]))
    return jnp.min(cand, axis=-1, keepdims=True)


def _pack_rows(blocks):
    """Concatenate 2-D f32 blocks (same lane width) into one slab; each block's
    row start is padded up to a multiple of 8 (f32 sublane tile) so every
    in-kernel view begins sublane-aligned.  Returns (slab, offsets)."""
    width = blocks[0].shape[1]
    parts, offs, cur = [], [], 0
    for b in blocks:
        offs.append(cur)
        parts.append(b)
        pad = (-b.shape[0]) % 8
        if pad:
            parts.append(jnp.zeros((pad, width), b.dtype))
        cur += b.shape[0] + pad
    return jnp.concatenate(parts, axis=0), offs


def _lstm_cell(gates, c_prev, hidden):
    """LSTM cell with i/f/o gate columns PRE-SCALED by 0.5 in the weights:
    sigmoid(x) == 0.5*tanh(x/2) + 0.5, so ONE full-width tanh on the (B,4H)
    tile replaces 3 sigmoids + 1 tanh (review: fewer EUP round-trips on the
    serial chain).  The 0.5 scale is a power of two -> exact in fp32."""
    t = jnp.tanh(gates)
    i = 0.5 * t[:, 0 * hidden:1 * hidden] + 0.5
    f = 0.5 * t[:, 1 * hidden:2 * hidden] + 0.5
    g = t[:, 2 * hidden:3 * hidden]
    o = 0.5 * t[:, 3 * hidden:4 * hidden] + 0.5
    c_new = f * c_prev + i * g
    h_new = o * jnp.tanh(c_new)
    return h_new, c_new


# ------------------------------- kernels ------------------------------------
def make_generate_kernel(num_layers, hidden, embed_dim, latent, vocab,
                         padding_size, out_width, w_offs, head_b_off):
    """Whole generate() loop fused in one kernel (PADDING steps, including the
    x-is-None first step).  Weights live in two packed VMEM slabs; h/c live in
    vregs across the statically unrolled time loop."""

    def kernel(z_ref, h0_ref, emb_ref, wslab_ref, head_ref, tok_ref):
        # ---- static, sublane-aligned slab views (prologue loads) ----
        wih0e = wslab_ref[w_offs[0]:w_offs[0] + embed_dim, :]   # (E, 4H) scaled
        wih0z = wslab_ref[w_offs[1]:w_offs[1] + latent, :]      # (LAT, 4H) scaled
        whh = [wslab_ref[w_offs[2]:w_offs[2] + hidden, :]]      # (H, 4H) scaled
        bias = [wslab_ref[w_offs[3]:w_offs[3] + 1, :]]          # (1, 4H) scaled
        wih = [None]
        for l in range(1, num_layers):
            base = 4 + 3 * (l - 1)
            wih.append(wslab_ref[w_offs[base + 0]:w_offs[base + 0] + hidden, :])
            whh.append(wslab_ref[w_offs[base + 1]:w_offs[base + 1] + hidden, :])
            bias.append(wslab_ref[w_offs[base + 2]:w_offs[base + 2] + 1, :])
        w_lin = head_ref[0:hidden, :]                           # (H, V)
        b_lin = head_ref[head_b_off:head_b_off + 1, :]          # (1, V)

        z = z_ref[...]                       # (B, LAT)
        emb = emb_ref[...]                   # (V, E)
        h = [h0_ref[l] for l in range(num_layers)]
        c = [jnp.zeros_like(h[l]) for l in range(num_layers)]

        batch = z.shape[0]
        lane_iota = jax.lax.broadcasted_iota(jnp.int32, (batch, vocab), 1)
        col_iota = jax.lax.broadcasted_iota(jnp.int32, (batch, out_width), 1)

        # Embedding table folded into layer-0 embed-row weights (one prologue
        # dot); removes one serial MXU round-trip from every recurrent step.
        emb_w0 = jnp.dot(emb, wih0e, preferred_element_type=jnp.float32)   # (V, 4H)
        # z is constant across time -> fold its gate contribution (+bias) once.
        zw0 = jnp.dot(z, wih0z, preferred_element_type=jnp.float32) + bias[0]

        def head(x_last):
            # argmax(log_softmax(logits)) == argmax(logits): monotone shift
            logits = jnp.dot(x_last, w_lin,
                             preferred_element_type=jnp.float32) + b_lin
            maxv = jnp.max(logits, axis=-1, keepdims=True)
            cand = jnp.where(logits == maxv, lane_iota, jnp.int32(vocab))
            idx = jnp.min(cand, axis=-1, keepdims=True)        # (B,1) first-occurrence
            onehot = (lane_iota == idx).astype(jnp.float32)    # (B,V)
            return idx, onehot

        toks = jnp.zeros((batch, out_width), jnp.int32)

        # step 0: x is None -> head on h[-1], state unchanged
        idx, onehot = head(h[-1])
        toks = jnp.where(col_iota == 0, idx, toks)

        for step in range(1, padding_size):
            # NOTE: dot(h[0], whh[0]) kept as a separate addend (not merged with
            # the token path) so it can overlap the previous step's argmax.
            gates = (jnp.dot(onehot, emb_w0, preferred_element_type=jnp.float32)
                     + jnp.dot(h[0], whh[0], preferred_element_type=jnp.float32)
                     + zw0)
            h[0], c[0] = _lstm_cell(gates, c[0], hidden)
            inp = h[0]
            for l in range(1, num_layers):
                gates = (jnp.dot(inp, wih[l], preferred_element_type=jnp.float32)
                         + jnp.dot(h[l], whh[l], preferred_element_type=jnp.float32)
                         + bias[l])
                h[l], c[l] = _lstm_cell(gates, c[l], hidden)
                inp = h[l]
            idx, onehot = head(inp)
            toks = jnp.where(col_iota == step, idx, toks)

        tok_ref[...] = toks                  # single lane-dense (B, 128) store

    return kernel


def make_lstm_step_kernel(num_layers, hidden, in_sizes, w_offs, head_b_off):
    """Single LSTM time-step (forward(x, ...) branch) + linear/argmax head.
    Weights come from one packed slab + one head slab."""

    def kernel(xz_ref, h_ref, c_ref, wslab_ref, head_ref, y_ref, nh_ref, nc_ref):
        inp = xz_ref[...]                                   # (B, E+LAT) for layer 0
        for l in range(num_layers):
            a, b, bb = w_offs[3 * l], w_offs[3 * l + 1], w_offs[3 * l + 2]
            wih = wslab_ref[a:a + in_sizes[l], :]           # (in_l, 4H) scaled
            whh = wslab_ref[b:b + hidden, :]                # (H, 4H)    scaled
            bias = wslab_ref[bb:bb + 1, :]                  # (1, 4H)    scaled
            gates = (jnp.dot(inp, wih, preferred_element_type=jnp.float32)
                     + jnp.dot(h_ref[l], whh, preferred_element_type=jnp.float32)
                     + bias)
            h_new, c_new = _lstm_cell(gates, c_ref[l], hidden)
            nh_ref[l] = h_new
            nc_ref[l] = c_new
            inp = h_new

        w_lin = head_ref[0:hidden, :]
        b_lin = head_ref[head_b_off:head_b_off + 1, :]
        logits = jnp.dot(inp, w_lin, preferred_element_type=jnp.float32) + b_lin
        # log_softmax dropped: argmax invariant under the monotone per-row shift
        y_ref[...] = _argmax_last(logits)

    return kernel


def make_head_kernel(hidden, head_b_off):
    """x is None branch: linear(h[-1]) -> argmax (== argmax of log_softmax)."""

    def kernel(h_last_ref, head_ref, y_ref):
        w_lin = head_ref[0:hidden, :]
        b_lin = head_ref[head_b_off:head_b_off + 1, :]
        logits = jnp.dot(h_last_ref[...], w_lin,
                         preferred_element_type=jnp.float32) + b_lin
        y_ref[...] = _argmax_last(logits)

    return kernel


# ------------------------------ wrapper -------------------------------------
class GeneratorPallas:
    def __init__(self, vocab_size, embedding_dim, hidden_size, num_layers,
                 latent_size, batch_size, padding_size, key):
        self.vocab_size = vocab_size
        self.embedding_dim = embedding_dim
        self.hidden_size = hidden_size
        self.num_layers = num_layers
        self.latent_size = latent_size
        self.batch_size = batch_size
        self.padding_size = padding_size

        n_keys = 2 * num_layers + 4 * num_layers + 2
        keys = list(jax.random.split(key, n_keys))
        k = iter(keys)
        s = 0.1

        # init[i] : Linear(latent -> hidden)
        self.init_w = [s * jax.random.normal(next(k), (hidden_size, latent_size), jnp.float32)
                       for _ in range(num_layers)]
        self.init_b = [s * jax.random.normal(next(k), (hidden_size,), jnp.float32)
                       for _ in range(num_layers)]

        # LSTM weights (PyTorch layout: weight_ih (4H, in), weight_hh (4H, H))
        self.w_ih, self.w_hh, self.b_ih, self.b_hh = [], [], [], []
        for l in range(num_layers):
            in_l = embedding_dim + latent_size if l == 0 else hidden_size
            self.w_ih.append(s * jax.random.normal(next(k), (4 * hidden_size, in_l), jnp.float32))
            self.w_hh.append(s * jax.random.normal(next(k), (4 * hidden_size, hidden_size), jnp.float32))
            self.b_ih.append(s * jax.random.normal(next(k), (4 * hidden_size,), jnp.float32))
            self.b_hh.append(s * jax.random.normal(next(k), (4 * hidden_size,), jnp.float32))

        # output Linear(hidden -> vocab)
        self.w_lin = s * jax.random.normal(next(k), (vocab_size, hidden_size), jnp.float32)
        self.b_lin = s * jax.random.normal(next(k), (vocab_size,), jnp.float32)

        # ---- pre-transposed / fused / gate-scaled forms for the kernels ----
        H = hidden_size
        # 0.5 on i/f/o gate columns (PyTorch gate order i,f,g,o); exact (2^-1).
        gate_scale = jnp.concatenate([
            jnp.full((H,), 0.5, jnp.float32), jnp.full((H,), 0.5, jnp.float32),
            jnp.ones((H,), jnp.float32), jnp.full((H,), 0.5, jnp.float32)], 0)

        wih_t_s = [w.T * gate_scale for w in self.w_ih]                 # (in_l, 4H)
        whh_t_s = [w.T * gate_scale for w in self.w_hh]                 # (H, 4H)
        b_gate_s = [((bi + bh) * gate_scale)[None, :]
                    for bi, bh in zip(self.b_ih, self.b_hh)]            # (1, 4H)
        self.w_lin_t = self.w_lin.T                                     # (H, V)
        self.b_lin2d = self.b_lin[None, :]                              # (1, V)

        # ---- packed slabs: cut ~12 tiny HBM->VMEM DMAs to 2-3 per call ----
        gen_blocks = [wih_t_s[0][:embedding_dim],     # layer-0 embed-row weights
                      wih_t_s[0][embedding_dim:],     # layer-0 latent-row weights
                      whh_t_s[0], b_gate_s[0]]
        for l in range(1, num_layers):
            gen_blocks += [wih_t_s[l], whh_t_s[l], b_gate_s[l]]
        self.gen_slab, self.gen_offs = _pack_rows(gen_blocks)           # (~136, 128)

        step_blocks = []
        for l in range(num_layers):
            step_blocks += [wih_t_s[l], whh_t_s[l], b_gate_s[l]]
        self.step_slab, self.step_offs = _pack_rows(step_blocks)        # (~136, 128)
        self.step_in_sizes = [embedding_dim + latent_size] + [hidden_size] * (num_layers - 1)

        self.head_slab, head_offs = _pack_rows([self.w_lin_t, self.b_lin2d])  # (40, V)
        self.head_b_off = head_offs[1]

        self._vmem = pl.BlockSpec(memory_space=pltpu.MemorySpace.VMEM)
        self._generate_jit = jax.jit(self._generate_impl)
        self._step_jit = jax.jit(self._step_impl)      # review: jit forward path
        self._head_jit = jax.jit(self._head_impl)

    # ---- fused generate(): ONE pallas_call for all padding_size steps ----
    def _generate_impl(self, z, word_embeddings):
        h0, _ = self.init_hidden(z)                  # tiny plain-JAX glue (fused by jit)
        toks = pl.pallas_call(
            make_generate_kernel(self.num_layers, self.hidden_size,
                                 self.embedding_dim, self.latent_size,
                                 self.vocab_size, self.padding_size,
                                 OUT_W, tuple(self.gen_offs), self.head_b_off),
            out_shape=jax.ShapeDtypeStruct((self.batch_size, OUT_W), jnp.int32),
            in_specs=[self._vmem] * 5,
            out_specs=self._vmem,
        )(z, h0, word_embeddings.astype(jnp.float32), self.gen_slab, self.head_slab)
        return toks[:, :self.padding_size]           # lane-dense store, slice in wrapper

    # ---- per-step Pallas call (forward API, jitted) ----
    def _step_impl(self, x, z, h, c, word_embeddings):
        embed = jnp.take(word_embeddings, x[:, 0], axis=0).astype(jnp.float32)  # (B, E)
        xz = jnp.concatenate([embed, z], axis=1)                                # (B, E+LAT)
        out_shape = (
            jax.ShapeDtypeStruct((self.batch_size, 1), jnp.int32),
            jax.ShapeDtypeStruct((self.num_layers, self.batch_size, self.hidden_size), jnp.float32),
            jax.ShapeDtypeStruct((self.num_layers, self.batch_size, self.hidden_size), jnp.float32),
        )
        return pl.pallas_call(
            make_lstm_step_kernel(self.num_layers, self.hidden_size,
                                  tuple(self.step_in_sizes),
                                  tuple(self.step_offs), self.head_b_off),
            out_shape=out_shape,
            in_specs=[self._vmem] * 5,
            out_specs=(self._vmem, self._vmem, self._vmem),
        )(xz, h, c, self.step_slab, self.head_slab)

    def _head_impl(self, h_last):
        return pl.pallas_call(
            make_head_kernel(self.hidden_size, self.head_b_off),
            out_shape=jax.ShapeDtypeStruct((self.batch_size, 1), jnp.int32),
            in_specs=[self._vmem] * 2,
            out_specs=self._vmem,
        )(h_last, self.head_slab)

    # ---- Generator.forward ----
    def forward(self, x, z, h, c, word_embeddings):
        if x is None:
            y = self._head_jit(h[-1])
            return y, h, c
        y, next_h, next_c = self._step_jit(x, z, h, c, word_embeddings)
        return y, next_h, next_c

    # ---- Generator.initHidden (glue) ----
    def init_hidden(self, z):
        hs = [jnp.tanh(z @ self.init_w[i].T + self.init_b[i]) for i in range(self.num_layers)]
        h = jnp.stack(hs, axis=0)
        c = jnp.zeros((self.num_layers, self.batch_size, self.hidden_size), jnp.float32)
        return h, c

    # ---- Generator.generate: single fused kernel, single dispatch ----
    def generate(self, word_embeddings, key):
        batch_z = jax.random.uniform(key, (self.batch_size, self.latent_size),
                                     jnp.float32, minval=-0.01, maxval=0.01)
        batch_fake_s = self._generate_jit(batch_z, word_embeddings)  # (B, PADDING) int32
        return batch_fake_s, batch_z


# --------------------- pure-JAX reference for checking ----------------------
def ref_forward(gen, x, z, h, c, emb_table):
    H = gen.hidden_size
    if x is None:
        logits = h[-1] @ gen.w_lin.T + gen.b_lin
        y = jnp.argmax(jax.nn.log_softmax(logits, axis=1), axis=1)[:, None].astype(jnp.int32)
        return y, h, c
    inp = jnp.concatenate([jnp.take(emb_table, x[:, 0], axis=0), z], axis=1)
    nh, nc = [], []
    for l in range(gen.num_layers):
        gates = inp @ gen.w_ih[l].T + gen.b_ih[l] + h[l] @ gen.w_hh[l].T + gen.b_hh[l]
        i = jax.nn.sigmoid(gates[:, 0 * H:1 * H])
        f = jax.nn.sigmoid(gates[:, 1 * H:2 * H])
        g = jnp.tanh(gates[:, 2 * H:3 * H])
        o = jax.nn.sigmoid(gates[:, 3 * H:4 * H])
        c_new = f * c[l] + i * g
        h_new = o * jnp.tanh(c_new)
        nh.append(h_new); nc.append(c_new)
        inp = h_new
    logits = inp @ gen.w_lin.T + gen.b_lin
    y = jnp.argmax(jax.nn.log_softmax(logits, axis=1), axis=1)[:, None].astype(jnp.int32)
    return y, jnp.stack(nh, 0), jnp.stack(nc, 0)


def ref_generate(gen, z, emb_table):
    h, c = gen.init_hidden(z)
    g_input = None
    cols = []
    for _ in range(gen.padding_size):
        y, h, c = ref_forward(gen, g_input, z, h, c, emb_table)
        cols.append(y[:, 0])
        g_input = y
    return jnp.stack(cols, axis=1)


# --------------------------------- main --------------------------------------
if __name__ == "__main__":
    root = jax.random.PRNGKey(0)
    k_params, k_emb, k_z, k_x, k_gen = jax.random.split(root, 5)

    gen = GeneratorPallas(VOCAB, EMBED, HIDDEN, LAYERS, LATENT, BATCH, PADDING, k_params)
    word_embeddings = 0.1 * jax.random.normal(k_emb, (VOCAB, EMBED), jnp.float32)

    # single forward step with an explicit word input x (shape (B, 1), like torch)
    z = jax.random.uniform(k_z, (BATCH, LATENT), jnp.float32, minval=-0.01, maxval=0.01)
    h, c = gen.init_hidden(z)
    x = jax.random.randint(k_x, (BATCH, 1), 0, VOCAB, jnp.int32)

    y, nh, nc = gen.forward(x, z, h, c, word_embeddings)
    jax.block_until_ready((y, nh, nc))

    # check against pure-JAX reference (both forward branches)
    y_ref, nh_ref, nc_ref = ref_forward(gen, x, z, h, c, word_embeddings)
    np.testing.assert_array_equal(np.asarray(y), np.asarray(y_ref))
    np.testing.assert_allclose(np.asarray(nh), np.asarray(nh_ref), rtol=1e-5, atol=1e-5)
    np.testing.assert_allclose(np.asarray(nc), np.asarray(nc_ref), rtol=1e-5, atol=1e-5)

    y0, _, _ = gen.forward(None, z, h, c, word_embeddings)
    y0_ref, _, _ = ref_forward(gen, None, z, h, c, word_embeddings)
    np.testing.assert_array_equal(np.asarray(y0), np.asarray(y0_ref))

    # fused generate() — one kernel for all padding_size steps
    fake_s, batch_z = gen.generate(word_embeddings, k_gen)
    jax.block_until_ready((fake_s, batch_z))
    assert fake_s.shape == (BATCH, PADDING)
    fake_ref = ref_generate(gen, batch_z, word_embeddings)
    np.testing.assert_array_equal(np.asarray(fake_s), np.asarray(fake_ref))

    print("KERNEL_OK")
</pallas_src>

<mosaic_0001>
module attributes {stable_mosaic.version = 11 : i64} {
  func.func @kernel(%arg0: memref<4x24xf32, #tpu.memory_space<vmem>>, %arg1: memref<2x4x32xf32, #tpu.memory_space<vmem>>, %arg2: memref<2x4x32xf32, #tpu.memory_space<vmem>>, %arg3: memref<136x128xf32, #tpu.memory_space<vmem>>, %arg4: memref<40x32xf32, #tpu.memory_space<vmem>>, %arg5: memref<4x1xi32, #tpu.memory_space<vmem>>, %arg6: memref<2x4x32xf32, #tpu.memory_space<vmem>>, %arg7: memref<2x4x32xf32, #tpu.memory_space<vmem>>) attributes {dimension_semantics = [], scalar_prefetch = 0 : i64, scratch_operands = 0 : i64, tpu.core_type = #tpu.core_type<tc>} {
    %c0 = arith.constant 0 : index
    %c0_0 = arith.constant 0 : index
    %0 = vector.load %arg0[%c0, %c0_0] : memref<4x24xf32, #tpu.memory_space<vmem>>, vector<4x24xf32>
    %c0_1 = arith.constant 0 : index
    %c0_2 = arith.constant 0 : index
    %1 = vector.load %arg3[%c0_1, %c0_2] : memref<136x128xf32, #tpu.memory_space<vmem>>, vector<24x128xf32>
    %c24 = arith.constant 24 : index
    %c0_3 = arith.constant 0 : index
    %2 = vector.load %arg3[%c24, %c0_3] : memref<136x128xf32, #tpu.memory_space<vmem>>, vector<32x128xf32>
    %c56 = arith.constant 56 : index
    %c0_4 = arith.constant 0 : index
    %3 = vector.load %arg3[%c56, %c0_4] : memref<136x128xf32, #tpu.memory_space<vmem>>, vector<1x128xf32>
    %cst = arith.constant dense<0.000000e+00> : vector<4x128xf32>
    %4 = tpu.matmul %0, %1, %cst {dimension_numbers = #tpu.dot_dimension_numbers<[1], [0], [0], [1], [0, 0, 1, 1], [], []>} : vector<4x24xf32>, vector<24x128xf32>, vector<4x128xf32> -> vector<4x128xf32>
    %c0_5 = arith.constant 0 : index
    %c0_6 = arith.constant 0 : index
    %c0_7 = arith.constant 0 : index
    %5 = vector.load %arg1[%c0_5, %c0_6, %c0_7] : memref<2x4x32xf32, #tpu.memory_space<vmem>>, vector<1x4x32xf32>
    %6 = vector.shape_cast %5 : vector<1x4x32xf32> to vector<4x32xf32>
    %cst_8 = arith.constant dense<0.000000e+00> : vector<4x128xf32>
    %7 = tpu.matmul %6, %2, %cst_8 {dimension_numbers = #tpu.dot_dimension_numbers<[1], [0], [0], [1], [0, 0, 1, 1], [], []>} : vector<4x32xf32>, vector<32x128xf32>, vector<4x128xf32> -> vector<4x128xf32>
    %8 = arith.addf %4, %7 : vector<4x128xf32>
    %9 = vector.broadcast %3 : vector<1x128xf32> to vector<4x128xf32>
    %10 = arith.addf %8, %9 : vector<4x128xf32>
    %c0_9 = arith.constant 0 : index
    %c0_10 = arith.constant 0 : index
    %c0_11 = arith.constant 0 : index
    %11 = vector.load %arg2[%c0_9, %c0_10, %c0_11] : memref<2x4x32xf32, #tpu.memory_space<vmem>>, vector<1x4x32xf32>
    %12 = vector.shape_cast %11 : vector<1x4x32xf32> to vector<4x32xf32>
    %13 = math.tanh %10 : vector<4x128xf32>
    %14 = vector.extract_strided_slice %13 {offsets = [0, 0], sizes = [4, 32], strides = [1, 1]} : vector<4x128xf32> to vector<4x32xf32>
    %cst_12 = arith.constant 5.000000e-01 : f32
    %15 = vector.broadcast %cst_12 : f32 to vector<4x32xf32>
    %16 = arith.mulf %15, %14 : vector<4x32xf32>
    %cst_13 = arith.constant 5.000000e-01 : f32
    %17 = vector.broadcast %cst_13 : f32 to vector<4x32xf32>
    %18 = arith.addf %16, %17 : vector<4x32xf32>
    %19 = vector.extract_strided_slice %13 {offsets = [0, 32], sizes = [4, 32], strides = [1, 1]} : vector<4x128xf32> to vector<4x32xf32>
    %cst_14 = arith.constant 5.000000e-01 : f32
    %20 = vector.broadcast %cst_14 : f32 to vector<4x32xf32>
    %21 = arith.mulf %20, %19 : vector<4x32xf32>
    %cst_15 = arith.constant 5.000000e-01 : f32
    %22 = vector.broadcast %cst_15 : f32 to vector<4x32xf32>
    %23 = arith.addf %21, %22 : vector<4x32xf32>
    %24 = vector.extract_strided_slice %13 {offsets = [0, 64], sizes = [4, 32], strides = [1, 1]} : vector<4x128xf32> to vector<4x32xf32>
    %25 = vector.extract_strided_slice %13 {offsets = [0, 96], sizes = [4, 32], strides = [1, 1]} : vector<4x128xf32> to vector<4x32xf32>
    %cst_16 = arith.constant 5.000000e-01 : f32
    %26 = vector.broadcast %cst_16 : f32 to vector<4x32xf32>
    %27 = arith.mulf %26, %25 : vector<4x32xf32>
    %cst_17 = arith.constant 5.000000e-01 : f32
    %28 = vector.broadcast %cst_17 : f32 to vector<4x32xf32>
    %29 = arith.addf %27, %28 : vector<4x32xf32>
    %30 = arith.mulf %23, %12 : vector<4x32xf32>
    %31 = arith.mulf %18, %24 : vector<4x32xf32>
    %32 = arith.addf %30, %31 : vector<4x32xf32>
    %33 = math.tanh %32 : vector<4x32xf32>
    %34 = arith.mulf %29, %33 : vector<4x32xf32>
    %c0_18 = arith.constant 0 : index
    %c0_19 = arith.constant 0 : index
    %c0_20 = arith.constant 0 : index
    %35 = vector.load %arg6[%c0_18, %c0_19, %c0_20] : memref<2x4x32xf32, #tpu.memory_space<vmem>>, vector<1x4x32xf32>
    %36 = vector.shape_cast %35 : vector<1x4x32xf32> to vector<4x32xf32>
    %37 = vector.shape_cast %34 : vector<4x32xf32> to vector<1x4x32xf32>
    tpu.vector_store %arg6[%c0_18, %c0_19, %c0_20], %37 {strides = array<i32>} : memref<2x4x32xf32, #tpu.memory_space<vmem>>, vector<1x4x32xf32>,
    %c0_21 = arith.constant 0 : index
    %c0_22 = arith.constant 0 : index
    %c0_23 = arith.constant 0 : index
    %38 = vector.load %arg7[%c0_21, %c0_22, %c0_23] : memref<2x4x32xf32, #tpu.memory_space<vmem>>, vector<1x4x32xf32>
    %39 = vector.shape_cast %38 : vector<1x4x32xf32> to vector<4x32xf32>
    %40 = vector.shape_cast %32 : vector<4x32xf32> to vector<1x4x32xf32>
    tpu.vector_store %arg7[%c0_21, %c0_22, %c0_23], %40 {strides = array<i32>} : memref<2x4x32xf32, #tpu.memory_space<vmem>>, vector<1x4x32xf32>,
    %c64 = arith.constant 64 : index
    %c0_24 = arith.constant 0 : index
    %41 = vector.load %arg3[%c64, %c0_24] : memref<136x128xf32, #tpu.memory_space<vmem>>, vector<32x128xf32>
    %c96 = arith.constant 96 : index
    %c0_25 = arith.constant 0 : index
    %42 = vector.load %arg3[%c96, %c0_25] : memref<136x128xf32, #tpu.memory_space<vmem>>, vector<32x128xf32>
    %c128 = arith.constant 128 : index
    %c0_26 = arith.constant 0 : index
    %43 = vector.load %arg3[%c128, %c0_26] : memref<136x128xf32, #tpu.memory_space<vmem>>, vector<1x128xf32>
    %cst_27 = arith.constant dense<0.000000e+00> : vector<4x128xf32>
    %44 = tpu.matmul %34, %41, %cst_27 {dimension_numbers = #tpu.dot_dimension_numbers<[1], [0], [0], [1], [0, 0, 1, 1], [], []>} : vector<4x32xf32>, vector<32x128xf32>, vector<4x128xf32> -> vector<4x128xf32>
    %c1 = arith.constant 1 : index
    %c0_28 = arith.constant 0 : index
    %c0_29 = arith.constant 0 : index
    %45 = vector.load %arg1[%c1, %c0_28, %c0_29] : memref<2x4x32xf32, #tpu.memory_space<vmem>>, vector<1x4x32xf32>
    %46 = vector.shape_cast %45 : vector<1x4x32xf32> to vector<4x32xf32>
    %cst_30 = arith.constant dense<0.000000e+00> : vector<4x128xf32>
    %47 = tpu.matmul %46, %42, %cst_30 {dimension_numbers = #tpu.dot_dimension_numbers<[1], [0], [0], [1], [0, 0, 1, 1], [], []>} : vector<4x32xf32>, vector<32x128xf32>, vector<4x128xf32> -> vector<4x128xf32>
    %48 = arith.addf %44, %47 : vector<4x128xf32>
    %49 = vector.broadcast %43 : vector<1x128xf32> to vector<4x128xf32>
    %50 = arith.addf %48, %49 : vector<4x128xf32>
    %c1_31 = arith.constant 1 : index
    %c0_32 = arith.constant 0 : index
    %c0_33 = arith.constant 0 : index
    %51 = vector.load %arg2[%c1_31, %c0_32, %c0_33] : memref<2x4x32xf32, #tpu.memory_space<vmem>>, vector<1x4x32xf32>
    %52 = vector.shape_cast %51 : vector<1x4x32xf32> to vector<4x32xf32>
    %53 = math.tanh %50 : vector<4x128xf32>
    %54 = vector.extract_strided_slice %53 {offsets = [0, 0], sizes = [4, 32], strides = [1, 1]} : vector<4x128xf32> to vector<4x32xf32>
    %cst_34 = arith.constant 5.000000e-01 : f32
    %55 = vector.broadcast %cst_34 : f32 to vector<4x32xf32>
    %56 = arith.mulf %55, %54 : vector<4x32xf32>
    %cst_35 = arith.constant 5.000000e-01 : f32
    %57 = vector.broadcast %cst_35 : f32 to vector<4x32xf32>
    %58 = arith.addf %56, %57 : vector<4x32xf32>
    %59 = vector.extract_strided_slice %53 {offsets = [0, 32], sizes = [4, 32], strides = [1, 1]} : vector<4x128xf32> to vector<4x32xf32>
    %cst_36 = arith.constant 5.000000e-01 : f32
    %60 = vector.broadcast %cst_36 : f32 to vector<4x32xf32>
    %61 = arith.mulf %60, %59 : vector<4x32xf32>
    %cst_37 = arith.constant 5.000000e-01 : f32
    %62 = vector.broadcast %cst_37 : f32 to vector<4x32xf32>
    %63 = arith.addf %61, %62 : vector<4x32xf32>
    %64 = vector.extract_strided_slice %53 {offsets = [0, 64], sizes = [4, 32], strides = [1, 1]} : vector<4x128xf32> to vector<4x32xf32>
    %65 = vector.extract_strided_slice %53 {offsets = [0, 96], sizes = [4, 32], strides = [1, 1]} : vector<4x128xf32> to vector<4x32xf32>
    %cst_38 = arith.constant 5.000000e-01 : f32
    %66 = vector.broadcast %cst_38 : f32 to vector<4x32xf32>
    %67 = arith.mulf %66, %65 : vector<4x32xf32>
    %cst_39 = arith.constant 5.000000e-01 : f32
    %68 = vector.broadcast %cst_39 : f32 to vector<4x32xf32>
    %69 = arith.addf %67, %68 : vector<4x32xf32>
    %70 = arith.mulf %63, %52 : vector<4x32xf32>
    %71 = arith.mulf %58, %64 : vector<4x32xf32>
    %72 = arith.addf %70, %71 : vector<4x32xf32>
    %73 = math.tanh %72 : vector<4x32xf32>
    %74 = arith.mulf %69, %73 : vector<4x32xf32>
    %c1_40 = arith.constant 1 : index
    %c0_41 = arith.constant 0 : index
    %c0_42 = arith.constant 0 : index
    %75 = vector.load %arg6[%c1_40, %c0_41, %c0_42] : memref<2x4x32xf32, #tpu.memory_space<vmem>>, vector<1x4x32xf32>
    %76 = vector.shape_cast %75 : vector<1x4x32xf32> to vector<4x32xf32>
    %77 = vector.shape_cast %74 : vector<4x32xf32> to vector<1x4x32xf32>
    tpu.vector_store %arg6[%c1_40, %c0_41, %c0_42], %77 {strides = array<i32>} : memref<2x4x32xf32, #tpu.memory_space<vmem>>, vector<1x4x32xf32>,
    %c1_43 = arith.constant 1 : index
    %c0_44 = arith.constant 0 : index
    %c0_45 = arith.constant 0 : index
    %78 = vector.load %arg7[%c1_43, %c0_44, %c0_45] : memref<2x4x32xf32, #tpu.memory_space<vmem>>, vector<1x4x32xf32>
    %79 = vector.shape_cast %78 : vector<1x4x32xf32> to vector<4x32xf32>
    %80 = vector.shape_cast %72 : vector<4x32xf32> to vector<1x4x32xf32>
    tpu.vector_store %arg7[%c1_43, %c0_44, %c0_45], %80 {strides = array<i32>} : memref<2x4x32xf32, #tpu.memory_space<vmem>>, vector<1x4x32xf32>,
    %c0_46 = arith.constant 0 : index
    %c0_47 = arith.constant 0 : index
    %81 = vector.load %arg4[%c0_46, %c0_47] : memref<40x32xf32, #tpu.memory_space<vmem>>, vector<32x32xf32>
    %c32 = arith.constant 32 : index
    %c0_48 = arith.constant 0 : index
    %82 = vector.load %arg4[%c32, %c0_48] : memref<40x32xf32, #tpu.memory_space<vmem>>, vector<1x32xf32>
    %cst_49 = arith.constant dense<0.000000e+00> : vector<4x32xf32>
    %83 = tpu.matmul %74, %81, %cst_49 {dimension_numbers = #tpu.dot_dimension_numbers<[1], [0], [0], [1], [0, 0, 1, 1], [], []>} : vector<4x32xf32>, vector<32x32xf32>, vector<4x32xf32> -> vector<4x32xf32>
    %84 = vector.broadcast %82 : vector<1x32xf32> to vector<4x32xf32>
    %85 = arith.addf %83, %84 : vector<4x32xf32>
    %86 = tpu.iota {dimensions = array<i32: 1>} : vector<4x32xi32>
    %cst_50 = arith.constant dense<0xFF800000> : vector<4xf32>
    %87 = vector.multi_reduction <maximumf>, %85, %cst_50 [1] : vector<4x32xf32> to vector<4xf32>
    %88 = vector.shape_cast %87 : vector<4xf32> to vector<4x1xf32>
    %89 = vector.broadcast %88 : vector<4x1xf32> to vector<4x32xf32>
    %90 = arith.cmpf oeq, %85, %89 : vector<4x32xf32>
    %c32_i32 = arith.constant 32 : i32
    %91 = vector.broadcast %c32_i32 : i32 to vector<4x32xi32>
    %92 = arith.select %90, %86, %91 : vector<4x32xi1>, vector<4x32xi32>
    %cst_51 = arith.constant dense<2147483647> : vector<4xi32>
    %93 = vector.multi_reduction <minsi>, %92, %cst_51 [1] : vector<4x32xi32> to vector<4xi32>
    %94 = vector.shape_cast %93 : vector<4xi32> to vector<4x1xi32>
    %c0_52 = arith.constant 0 : index
    %c0_53 = arith.constant 0 : index
    %95 = vector.load %arg5[%c0_52, %c0_53] : memref<4x1xi32, #tpu.memory_space<vmem>>, vector<4x1xi32>
    tpu.vector_store %arg5[%c0_52, %c0_53], %94 {strides = array<i32>} : memref<4x1xi32, #tpu.memory_space<vmem>>, vector<4x1xi32>,
    return
  }
}

</mosaic_0001>

<bundles_post_ra>
// kernel: _step_impl.1
= control target key start
LH: loop header
LB: loop body
LE: loop exit
PB: predicated region body
PF: predicated region fallthrough
CT: control target
= control target key end

     0   :  { %13 = vsyncpa [#allocation3], 0  ;;  %s550_s0 = inlined_call_operand.vmem [shape: f32[4,24], index: 0, kind: input, shape index: {}]   ;;  %s551_s1 = inlined_call_operand.vmem [shape: f32[2,4,32], index: 1, kind: input, shape index: {}]   ;;  %s552_s2 = inlined_call_operand.vmem [shape: f32[2,4,32], index: 2, kind: input, shape index: {}]   ;;  %s553_s3 = inlined_call_operand.hbm [shape: f32[136,128], index: 3, kind: input, shape index: {}]   ;;  %s554_s4 = inlined_call_operand.vmem [shape: f32[40,32], index: 4, kind: input, shape index: {}]   ;;  %s555_s5 = inlined_call_operand.vmem [shape: s32[4,1], index: 5, kind: output, shape index: {0}]   ;;  %s556_s6 = inlined_call_operand.hbm [shape: f32[2,4,32], index: 6, kind: output, shape index: {1}]   ;;  %s557_s7 = inlined_call_operand.hbm [shape: f32[2,4,32], index: 7, kind: output, shape index: {2}]  }
   0x1   :  { %14 = vsyncpa [#allocation4], 0 }
   0x2   :  { %15 = vsyncpa [#allocation7], 0  ;;  %s26_s26 = sshll.u32 %s553_s3, 4  ;;  %s431_s27 = smov [#allocation2]   ;;  %s27_s26 = int_to_ptr.hbm [resolvable:$true] %s26_s26 }
   0x3   :  { %s28_s28 = sshll.u32 %s431_s27, 4  ;;  %s432_s29 = smov 128   ;;  %s29_s28 = int_to_ptr.vmem [resolvable:$true] %s28_s28 }
   0x4   :  { %s433_s30 = smov 8  }
   0x5   :  { %34 = dma.hbm_to_vmem [thread:$0]  %s27_s26, 2176, %s29_s28, [#allocation3], %s432_s29, %s432_s29, %s433_s30  }
   0x6   :  { %425 = dma.done.wait [#allocation3], 2176  }
   0x7   :  { %426 = vsyncadd [#allocation3], 4294965120  ;;  %v48_v0 = vld [vmem:[#allocation2 + $0x30] sm:$0xff]  ;;  %v47_v1 = vld [vmem:[#allocation2 + $0x28] sm:$0xff]  ;;  %vm75_vm0 = vcmask 195584   ;;  %vm51_vm1 = vcmask 261120  }
   0x8   :  { %v44_v2 = vld [vmem:[#allocation2 + $0x10] sm:$0xff]  ;;  %67 = vmatpush.msra.mxu0 %v48_v0  ;;  %v43_v3 = vld [vmem:[#allocation2 + $0x8] sm:$0xff]  ;;  %v46_v4 = vld [vmem:[#allocation2 + $0x20] sm:$0xff]  ;;  %s435_s13 = smov 32   ;;  %vm130_vm2 = vcmask 257024   ;;  %s436_s26 = smov 96   ;;  %v261_v0 = vlaneseq }
   0x9   :  { %92 = vmatpush.msra.mxu1 %v44_v2  ;;  %v42_v5 = vld [vmem:[#allocation2] sm:$0xff]  ;;  %v45_v7 = vld [vmem:[#allocation2 + $0x18] sm:$0xff]  ;;  %v143_v27 = vld [vmem:[#allocation2 + $0x70] sm:$0xff]  ;;  %s293_s30 = sshll.u32 %s556_s6, 4  ;;  %s438_s8 = smov 4   ;;  %vm283_vm5 = vcmask 3072   ;;  %s294_s30 = int_to_ptr.hbm [resolvable:$true] %s293_s30 }
   0xa   :  { %v41_v6 = vld [vmem:[%s550_s0] sm:$0xf]  ;;  %68 = vmatpush.msra.mxu0 %v47_v1  ;;  %v342_v10 = vld [vmem:[#allocation2 + $0x38] ss:$0 sm:$0xff]  ;;  %s434_s0 = smov 64   ;;  %v139_v28 = vld [vmem:[#allocation2 + $0x50] sm:$0xff] }
   0xb   :  { %93 = vmatpush.msra.mxu1 %v43_v3  ;;  %v50_v8 = vld [vmem:[%s551_s1] sm:$0xf]  ;;  %v144_v25 = vld [vmem:[#allocation2 + $0x78] sm:$0xff]  ;;  %v142_v29 = vld [vmem:[#allocation2 + $0x68] sm:$0xff]  ;;  %v262_v1 = vand.u32 127, %v261_v0  ;;  %s439_s9 = smov [#allocation6]  }
   0xc   :  { %69 = vmatpush.msra.mxu0 %v46_v4  ;;  %v101_v15 = vld [vmem:[%s552_s2] sm:$0xf]  ;;  %v140_v26 = vld [vmem:[#allocation2 + $0x58] sm:$0xff]  ;;  %163 = vmatpush.msra.mxu2 %v144_v25  ;;  %v138_v30 = vld [vmem:[#allocation2 + $0x48] sm:$0xff]  ;;  %s304_s3 = sshll.u32 %s439_s9, 4  ;;  %s306_s12 = sshll.u32 %s557_s7, 4  ;;  %s305_s3 = int_to_ptr.vmem [resolvable:$true] %s304_s3  ;;  %s307_s12 = int_to_ptr.hbm [resolvable:$true] %s306_s12 }
   0xd   :  { %94 = vmatpush.msra.mxu1 %v42_v5  ;;  %185 = vmatpush.msra.mxu3 %v140_v26  ;;  %v141_v31 = vld [vmem:[#allocation2 + $0x60] sm:$0xff]  ;;  %v236_v53 = vld [vmem:[%s554_s4 + $0x18] sm:$0xff]  ;;  %v235_v54 = vld [vmem:[%s554_s4 + $0x10] sm:$0xff] }
   0xe   :  { %327 = vmatmul.msk.f32.vlgmr.msra.gmra.mxu1 %vm75_vm0, %v41_v6  ;;  %70 = vmatpush.msra.mxu0 %v45_v7  ;;  %v137_v32 = vld [vmem:[#allocation2 + $0x40] sm:$0xff]  ;;  %v234_v55 = vld [vmem:[%s554_s4 + $0x8] sm:$0xff] }
   0xf   :  { %326 = vmatmul.msk.f32.vlgmr.msra.gmra.mxu0 %vm51_vm1, %v50_v8  ;;  %164 = vmatpush.msra.mxu2 %v143_v27  ;;  %v328_v35 = vld [vmem:[%s551_s1 + $0x4] sm:$0xf]  ;;  %v343_v39 = vld [vmem:[#allocation2 + $0x80] ss:$0 sm:$0xff] }
  0x10   :  { %186 = vmatpush.msra.mxu3 %v139_v28  ;;  %v331_v36 = vld [vmem:[%s552_s2 + $0x4] sm:$0xf]  ;;  %253 = vmatpush.msrb.mxu1 %v236_v53  ;;  %v344_v60 = vld [vmem:[%s554_s4 + $0x20] ss:$0 sm:$0xff] }
  0x11   :  { %165 = vmatpush.msra.mxu2 %v142_v29  ;;  %v233_v56 = vld [vmem:[%s554_s4] sm:$0xff]  ;;  %s437_s4 = smov [#allocation5]  }
  0x12   :  { %187 = vmatpush.msra.mxu3 %v138_v30  ;;  %254 = vmatpush.msrb.mxu1 %v235_v54  ;;  %s291_s27 = sshll.u32 %s437_s4, 4  ;;  %s292_s27 = int_to_ptr.vmem [resolvable:$true] %s291_s27 }
  0x13   :  { %166 = vmatpush.msra.mxu2 %v141_v31 }
  0x14   :  { %188 = vmatpush.msra.mxu3 %v137_v32  ;;  %329 = vmatmul.msk.f32.vlgmr.msra.gmra.mxu2 %vm51_vm1, %v328_v35 }
  0x15   :  { %255 = vmatpush.msrb.mxu1 %v234_v55 }
  0x17   :  { %256 = vmatpush.msrb.mxu1 %v233_v56 }
  0x8b   :  { %v96_v9 = vpop.f32.mrf.mxu1 }
  0x8c   :  { %v72_v11 = vpop.f32.mrf.mxu0 }
  0x8d   :  { %v97_v12 = vadd.f32 %v96_v9, %v72_v11 }
  0x8f   :  { %v100_v13 = vadd.f32 %v342_v10, %v97_v12 }
  0x91   :  { %345 = vtanh.f32 %v100_v13 }
  0x97   :  { %v346_v14 = vpop.eup %345  ;;  %v168_v38 = vpop.f32.mrf.mxu2 }
  0x98   :  { %111 = vrot.lane.b32.xlu0 %v346_v14, %s434_s0  ;;  %v103_v16 = vmul.f32 0.5, %v346_v14 }
  0x9a   :  { %v104_v17 = vadd.f32 0.5, %v103_v16 }
  0xa0   :  { %106 = vrot.lane.b32.xlu0 %v101_v15, %s435_s13 }
  0xa8   :  { %201 = vrot.lane.b32.xlu0 %v331_v36, %s435_s13 }
 0x10a   :  { %v112_v18 = vpop.permute.xlu0 %111 }
 0x10b   :  { %v114_v19 = vmul.f32 %v112_v18, %v104_v17 }
 0x10d   :  { %116 = vrot.lane.b32.xlu1 %v114_v19, %s435_s13 }
 0x112   :  { %v107_v20 = vpop.permute.xlu0 %106 }
 0x113   :  { %v109_v21 = vmul.f32 %v107_v20, %v104_v17 }
 0x11a   :  { %v202_v48 = vpop.permute.xlu0 %201 }
 0x17f   :  { %v117_v22 = vpop.permute.xlu1 %116 }
 0x180   :  { %v496_v23 = vadd.f32 %v117_v22, %v109_v21 }
 0x182   :  { %347 = vtanh.f32 %v496_v23 }
 0x188   :  { %v348_v24 = vpop.eup %347 }
 0x189   :  { %122 = vrot.lane.b32.xlu1 %v348_v24, %s434_s0 }
 0x1fb   :  { %v123_v33 = vpop.permute.xlu1 %122 }
 0x1fc   :  { %v125_v34 = vmul.f32 %v123_v33, %v104_v17 }
 0x1fe   :  { %127 = vrot.lane.b32.xlu2 %v125_v34, %s435_s13 }
 0x258   :  { %v128_v37 = vpop.permute.xlu2 %127 }
 0x259   :  { %131 = vst.msk [vmem:[#allocation5] sm:$0xf] %vm130_vm2, %v128_v37  ;;  %330 = vmatmul.msk.f32.vlgmr.msra.gmra.mxu3 %vm51_vm1, %v128_v37 }
 0x2dc   :  { %v190_v40 = vpop.f32.mrf.mxu3 }
 0x2dd   :  { %v191_v41 = vadd.f32 %v190_v40, %v168_v38 }
 0x2df   :  { %v194_v42 = vadd.f32 %v343_v39, %v191_v41 }
 0x2e1   :  { %349 = vtanh.f32 %v194_v42 }
 0x2e7   :  { %v350_v43 = vpop.eup %349 }
 0x2e8   :  { %206 = vrot.lane.b32.xlu2 %v350_v43, %s434_s0  ;;  %v198_v44 = vmul.f32 0.5, %v350_v43 }
 0x2ea   :  { %v199_v45 = vadd.f32 0.5, %v198_v44 }
 0x2ec   :  { %v204_v49 = vmul.f32 %v202_v48, %v199_v45 }
 0x342   :  { %v207_v46 = vpop.permute.xlu2 %206 }
 0x343   :  { %v209_v47 = vmul.f32 %v207_v46, %v199_v45 }
 0x345   :  { %211 = vrot.lane.b32.xlu1 %v209_v47, %s435_s13 }
 0x3b7   :  { %v212_v50 = vpop.permute.xlu1 %211 }
 0x3b8   :  { %v214_v51 = vadd.f32 %v212_v50, %v204_v49 }
 0x3ba   :  { %351 = vtanh.f32 %v214_v51 }
 0x3c0   :  { %v352_v52 = vpop.eup %351 }
 0x3c1   :  { %217 = vrot.lane.b32.xlu2 %v352_v52, %s434_s0 }
 0x41b   :  { %v218_v57 = vpop.permute.xlu2 %217 }
 0x41c   :  { %v220_v58 = vmul.f32 %v218_v57, %v199_v45 }
 0x41e   :  { %222 = vrot.lane.b32.xlu0 %v220_v58, %s435_s13 }
 0x490   :  { %v223_v59 = vpop.permute.xlu0 %222 }
 0x491   :  { %226 = vst.msk [vmem:[#allocation5 + $0x4] sm:$0xf] %vm130_vm2, %v223_v59  ;;  %332 = vmatmul.msk.f32.vlgmr.msrb.gmra.mxu1 %vm51_vm1, %v223_v59 }
 0x492   :  { %299 = dma.vmem_to_hbm [thread:$0]  %s292_s27, 128, %s294_s30, [#allocation4], %s434_s0, %s434_s0, %s438_s8  }
 0x50e   :  { %v258_v61 = vpop.f32.mrf.mxu1 }
 0x50f   :  { %v259_v62 = vadd.f32 %v344_v60, %v258_v61 }
 0x511   :  { %v263_v63 = vsel %vm130_vm2, %v259_v62, -inf }
 0x512   :  { %264 = vmax.xlane.f32.xlu1 %v263_v63 }
 0x52b   :  { %228 = vrot.lane.b32.xlu1 %v214_v51, %s436_s26 }
 0x585   :  { %v265_v2 = vpop.xlane.xlu1 %264 }
 0x586   :  { %vm266_vm3 = vcmp.eq.f32.partialorder %v259_v62, %v265_v2 }
 0x587   :  { %v267_v3 = vsel %vm266_vm3, %v262_v1, 32 }
 0x588   :  { %v268_v4 = vsel %vm130_vm2, %v267_v3, 2147483647 }
 0x589   :  { %v270_v5 = vshra.s32 %v268_v4, 16  ;;  %v269_v8 = vand.u32 65535, %v268_v4 }
 0x58b   :  { %v272_v6 = vcvt.s32.f32 %v270_v5  ;;  %v271_v10 = vcvt.s32.f32 %v269_v8 }
 0x58d   :  { %273 = vmin.xlane.f32.xlu2 %v272_v6 }
 0x59d   :  { %v229_v7 = vpop.permute.xlu1 %228 }
 0x59e   :  { %232 = vst.msk [vmem:[#allocation6 + $0x4] sm:$0xf] %vm130_vm2, %v229_v7 }
 0x5a5   :  { %133 = vrot.lane.b32.xlu2 %v496_v23, %s436_s26 }
 0x600   :  { %v274_v9 = vpop.xlane.xlu2 %273 }
 0x601   :  { %vm275_vm4 = vcmp.eq.f32.partialorder %v272_v6, %v274_v9  ;;  %v280_v13 = vcvt.f32.s32 %v274_v9 }
 0x602   :  { %v276_v11 = vsel %vm275_vm4, %v271_v10, inf }
 0x603   :  { %277 = vmin.xlane.f32.xlu0 %v276_v11  ;;  %v281_v15 = vshll.u32 %v280_v13, 16 }
 0x608   :  { %v134_v12 = vpop.permute.xlu2 %133 }
 0x609   :  { %136 = vst.msk [vmem:[#allocation6] sm:$0xf] %vm130_vm2, %v134_v12 }
 0x60a   :  { %312 = dma.vmem_to_hbm [thread:$0]  %s305_s3, 128, %s307_s12, [#allocation7], %s434_s0, %s434_s0, %s438_s8  }
 0x676   :  { %v278_v14 = vpop.xlane.xlu0 %277 }
 0x677   :  { %v279_v16 = vcvt.f32.s32 %v278_v14 }
 0x679   :  { %v282_v17 = vadd.s32 %v281_v15, %v279_v16 }
 0x67b   :  { %284 = vst.msk [vmem:[%s555_s5] sm:$0xf] %vm283_vm5, %v282_v17 }
 0x67c   :  { %427 = dma.done.wait [#allocation4], 128  }
 0x67d   :  { %428 = vsyncadd [#allocation4], 4294967168 }
 0x67e   :  { %429 = dma.done.wait [#allocation7], 128  }
 0x67f   :  { %430 = vsyncadd [#allocation7], 4294967168 }
 0x680   :  { %323 = vsyncpa [#allocation3], 1 }
 0x681   :  { %324 = vsyncpa [#allocation4], 1 }
 0x682   :  { %325 = vsyncpa [#allocation7], 1 }

</bundles_post_ra>
